<compile_context>
chip_gen: v5e
topology: v5e:2x2
jax: 0.10.0
libtpu: 0.0.40
codegen_flags: <defaults>
</compile_context>

<pallas_src>
import functools

import jax
import jax.numpy as jnp
from jax.experimental import pallas as pl
from jax.experimental.pallas import tpu as pltpu


_VMEM_LIMIT_BYTES = 32 * 1024 * 1024  # conservative: fits v7x (64 MiB phys) too


def _round_up(x, m):
    return ((x + m - 1) // m) * m


def _pick_tile(dim, candidates):
    """Largest candidate that evenly divides dim, else the full dim."""
    for c in candidates:
        if dim % c == 0:
            return c
    return dim


# ---------------- Phase 1: h = x @ W^T (computed once, lane-dense output) ----
def _linear_kernel(x_ref, w_ref, h_ref):
    # Contract x's Din (axis 1) with weight's Din (axis 1): the MXU consumes
    # the [Dout_pad, Din] weight directly — no transpose op, no extra HBM trip.
    h = jax.lax.dot_general(
        x_ref[...], w_ref[...],
        dimension_numbers=(((1,), (1,)), ((), ())),
        preferred_element_type=jnp.float32)
    h_ref[...] = h.astype(h_ref.dtype)


# ---------------- Phase 2: out = activation(adj @ h), streamed over (i, k) ---
def _aggregate_kernel(adj_ref, h_ref, out_ref, acc_ref, *, activation):
    k = pl.program_id(1)

    @pl.when(k == 0)
    def _():
        acc_ref[...] = jnp.zeros_like(acc_ref)

    acc_ref[...] += jnp.dot(adj_ref[...], h_ref[...],
                            preferred_element_type=jnp.float32)

    @pl.when(k == pl.num_programs(1) - 1)
    def _():
        out_ref[...] = activation(acc_ref[...]).astype(out_ref.dtype)


def gcn_conv(x, weight, adj, activation=jax.nn.relu,
             compute_dtype=jnp.bfloat16, out_dtype=None):
    """GCN convolution: activation(adj @ (x @ W^T)).

    x: [N, Din], weight: [Dout, Din], adj: [N, N]  ->  [N, Dout]
    `activation` mirrors the ConvClass ctor arg (any jnp-traceable callable).
    """
    n, din = x.shape
    dout = weight.shape[0]
    out_dtype = out_dtype or x.dtype

    # Lane-dense outputs: pad Dout up to a multiple of 128 by zero-padding the
    # weight rows (free on the MXU; padded columns are sliced off at the end).
    dout_pad = _round_up(dout, 128)

    # bf16 matmul operands, f32 accumulation; elementwise/activation stays f32.
    x_c = x.astype(compute_dtype)
    adj_c = adj.astype(compute_dtype)
    w_pad = jnp.zeros((dout_pad, din), compute_dtype)
    w_pad = w_pad.at[:dout, :].set(weight.astype(compute_dtype))

    # ---- Phase 1: h = x @ W^T ------------------------------------------------
    tm_lin = _pick_tile(n, (512, 256, 128, 64, 32, 16, 8))
    h = pl.pallas_call(
        _linear_kernel,
        out_shape=jax.ShapeDtypeStruct((n, dout_pad), compute_dtype),
        grid=(n // tm_lin,),
        in_specs=[
            pl.BlockSpec((tm_lin, din), lambda i: (i, 0)),
            pl.BlockSpec((dout_pad, din), lambda i: (0, 0)),
        ],
        out_specs=pl.BlockSpec((tm_lin, dout_pad), lambda i: (i, 0)),
        compiler_params=pltpu.CompilerParams(
            dimension_semantics=("parallel",),
            vmem_limit_bytes=_VMEM_LIMIT_BYTES),
        cost_estimate=pl.CostEstimate(
            flops=2 * n * din * dout_pad,
            transcendentals=0,
            bytes_accessed=2 * (n * din + dout_pad * din + n * dout_pad)),
    )(x_c, w_pad)

    # ---- Phase 2: out = activation(adj @ h) ----------------------------------
    # Row tile (sublane axis) and k tile (adj lane axis; x128 or full dim).
    tm = _pick_tile(n, (256, 128, 64, 32, 16, 8))
    tk = _pick_tile(n, (512, 256, 128))
    # TODO(synk): if the adj DMA is still exposed at large N, sweep
    # pipeline_mode=pl.Buffered(3) on the adj BlockSpec.
    out_padded = pl.pallas_call(
        functools.partial(_aggregate_kernel, activation=activation),
        out_shape=jax.ShapeDtypeStruct((n, dout_pad), out_dtype),
        grid=(n // tm, n // tk),
        in_specs=[
            pl.BlockSpec((tm, tk), lambda i, k: (i, k)),
            pl.BlockSpec((tk, dout_pad), lambda i, k: (k, 0)),
        ],
        out_specs=pl.BlockSpec((tm, dout_pad), lambda i, k: (i, 0)),
        scratch_shapes=[pltpu.VMEM((tm, dout_pad), jnp.float32)],
        compiler_params=pltpu.CompilerParams(
            dimension_semantics=("parallel", "arbitrary"),
            vmem_limit_bytes=_VMEM_LIMIT_BYTES),
        cost_estimate=pl.CostEstimate(
            flops=2 * n * n * dout_pad,
            transcendentals=0,
            bytes_accessed=(2 * n * n + 2 * n * dout_pad
                            + jnp.dtype(out_dtype).itemsize * n * dout_pad)),
    )(adj_c, h)

    # TODO(synk): at toy sizes (N=64) per-call overhead dominates — batch many
    # graphs / fuse multiple GCN layers into one call for real workloads.
    return out_padded[:, :dout]


def make_orthogonal_weight(key, output_dim, input_dim):
    """Deterministic orthogonal init with gain = 1/sqrt(input_dim),
    mirroring nn.init.orthogonal_(weight, gain=stdv)."""
    a = jax.random.normal(key, (max(output_dim, input_dim),
                                min(output_dim, input_dim)), jnp.float32)
    q, r = jnp.linalg.qr(a)
    q = q * jnp.sign(jnp.diagonal(r))[None, :]
    if output_dim < input_dim:
        q = q.T
    w = q[:output_dim, :input_dim]
    stdv = 1.0 / jnp.sqrt(jnp.float32(input_dim))
    return (stdv * w).astype(jnp.float32)


if __name__ == "__main__":
    key = jax.random.PRNGKey(0)
    k_x, k_adj, k_w = jax.random.split(key, 3)

    N, INPUT_DIM, OUTPUT_DIM = 64, 32, 16

    x = jax.random.normal(k_x, (N, INPUT_DIM), jnp.float32)

    # symmetric, row-normalized adjacency-like matrix (deterministic)
    a = (jax.random.uniform(k_adj, (N, N)) > 0.7).astype(jnp.float32)
    a = jnp.maximum(a, a.T) + jnp.eye(N, dtype=jnp.float32)
    adj = a / jnp.sum(a, axis=1, keepdims=True)

    weight = make_orthogonal_weight(k_w, OUTPUT_DIM, INPUT_DIM)

    out = gcn_conv(x, weight, adj)  # activation defaults to ReLU
    out = jax.block_until_ready(out)
    assert out.shape == (N, OUTPUT_DIM)

    # Step-matched reference (same bf16 operand rounding, f32 accumulation).
    x_b = x.astype(jnp.bfloat16)
    w_b = weight.astype(jnp.bfloat16)
    adj_b = adj.astype(jnp.bfloat16)
    h_ref = jax.lax.dot_general(
        x_b, w_b, dimension_numbers=(((1,), (1,)), ((), ())),
        preferred_element_type=jnp.float32).astype(jnp.bfloat16)
    ref_bf16 = jnp.maximum(
        jnp.dot(adj_b, h_ref, preferred_element_type=jnp.float32), 0.0)
    assert jnp.allclose(out, ref_bf16, atol=1e-2, rtol=1e-2)

    # Loose check against the pure-f32 math (only bf16 operand rounding differs).
    ref_f32 = jnp.maximum(adj @ (x @ weight.T), 0.0)
    assert jnp.allclose(out, ref_f32, atol=5e-2, rtol=5e-2)

    print("KERNEL_OK")
</pallas_src>

<mosaic_0001>
module attributes {stable_mosaic.version = 11 : i64} {
  func.func @_linear_kernel(%arg0: i32, %arg1: memref<64x32xbf16, #tpu.memory_space<vmem>>, %arg2: memref<128x32xbf16, #tpu.memory_space<vmem>>, %arg3: memref<64x128xbf16, #tpu.memory_space<vmem>>) attributes {dimension_semantics = [#tpu.dimension_semantics<parallel>], iteration_bounds = array<i64: 1>, scalar_prefetch = 0 : i64, scratch_operands = 0 : i64, tpu.core_type = #tpu.core_type<tc>, window_params = [{transform_indices = @transform_0, window_bounds = array<i64: 64, 32>}, {pipeline_mode = #tpu.pipeline_mode<synchronous>, transform_indices = @transform_1, window_bounds = array<i64: 128, 32>}, {transform_indices = @transform_2, window_bounds = array<i64: 64, 128>}]} {
    %c0 = arith.constant 0 : index
    %c0_0 = arith.constant 0 : index
    %0 = vector.load %arg1[%c0, %c0_0] : memref<64x32xbf16, #tpu.memory_space<vmem>>, vector<64x32xbf16>
    %c0_1 = arith.constant 0 : index
    %c0_2 = arith.constant 0 : index
    %1 = vector.load %arg2[%c0_1, %c0_2] : memref<128x32xbf16, #tpu.memory_space<vmem>>, vector<128x32xbf16>
    %cst = arith.constant dense<0.000000e+00> : vector<64x128xf32>
    %2 = tpu.matmul %0, %1, %cst {dimension_numbers = #tpu.dot_dimension_numbers<[1], [1], [0], [0], [0, 0, 1, 0], [], []>} : vector<64x32xbf16>, vector<128x32xbf16>, vector<64x128xf32> -> vector<64x128xf32>
    %3 = arith.truncf %2 : vector<64x128xf32> to vector<64x128xbf16>
    %c0_3 = arith.constant 0 : index
    %c0_4 = arith.constant 0 : index
    %4 = vector.load %arg3[%c0_3, %c0_4] : memref<64x128xbf16, #tpu.memory_space<vmem>>, vector<64x128xbf16>
    tpu.vector_store %arg3[%c0_3, %c0_4], %3 {strides = array<i32>} : memref<64x128xbf16, #tpu.memory_space<vmem>>, vector<64x128xbf16>,
    return
  }
  func.func @transform_0(%arg0: i32) -> (i32, i32) {
    %c0_i32 = arith.constant 0 : i32
    %c0_i32_0 = arith.constant 0 : i32
    return %arg0, %c0_i32 : i32, i32
  }
  func.func @transform_1(%arg0: i32) -> (i32, i32) {
    %c0_i32 = arith.constant 0 : i32
    %c0_i32_0 = arith.constant 0 : i32
    %c0_i32_1 = arith.constant 0 : i32
    return %c0_i32, %c0_i32_0 : i32, i32
  }
  func.func @transform_2(%arg0: i32) -> (i32, i32) {
    %c0_i32 = arith.constant 0 : i32
    %c0_i32_0 = arith.constant 0 : i32
    return %arg0, %c0_i32 : i32, i32
  }
}

</mosaic_0001>

<bundles_post_ra>
// kernel: tpu_custom_call.1
= control target key start
LH: loop header
LB: loop body
LE: loop exit
PB: predicated region body
PF: predicated region fallthrough
CT: control target
= control target key end

     0   :  { %vm96_vm0 = vcmask 261120   ;;  %s405_s0 = inlined_call_operand.vmem [shape: bf16[64,32], index: 0, kind: input, shape index: {}]   ;;  %s406_s1 = inlined_call_operand.vmem [shape: bf16[128,32], index: 1, kind: input, shape index: {}]   ;;  %s407_s2 = inlined_call_operand.hbm [shape: bf16[64,128], index: 2, kind: output, shape index: {}]  }
   0x1   :  { %v259_v0 = vld [vmem:[%s406_s1 + $0x38] sm:$0xff] }
   0x2   :  { %7 = vsyncpa [#allocation3], 0  ;;  %v131_v1 = vsel %vm96_vm0, %v259_v0, 0  ;;  %v258_v2 = vld [vmem:[%s406_s1 + $0x30] sm:$0xff]  ;;  %v257_v4 = vld [vmem:[%s406_s1 + $0x28] sm:$0xff]  ;;  %s336_s4 = smov [#allocation2]  }
   0x3   :  { %133 = vmatpush.bf16.xpose.msra.mxu0 %v131_v1  ;;  %283 = vmatpush.bf16.xpose.msra.mxu1 %v131_v1  ;;  %v128_v3 = vsel %vm96_vm0, %v258_v2, 0  ;;  %v125_v5 = vsel %vm96_vm0, %v257_v4, 0  ;;  %v256_v6 = vld [vmem:[%s406_s1 + $0x20] sm:$0xff]  ;;  %v255_v8 = vld [vmem:[%s406_s1 + $0x18] sm:$0xff]  ;;  %v254_v10 = vld [vmem:[%s406_s1 + $0x10] sm:$0xff]  ;;  %s184_s7 = sshll.u32 %s407_s2, 4  ;;  %s185_s7 = int_to_ptr.hbm [resolvable:$true] %s184_s7 }
   0x4   :  { %284 = vmatpush.bf16.xpose.msra.mxu2 %v131_v1  ;;  %285 = vmatpush.bf16.xpose.msra.mxu3 %v131_v1  ;;  %v122_v7 = vsel %vm96_vm0, %v256_v6, 0  ;;  %v119_v9 = vsel %vm96_vm0, %v255_v8, 0  ;;  %v116_v11 = vsel %vm96_vm0, %v254_v10, 0  ;;  %v253_v12 = vld [vmem:[%s406_s1 + $0x8] sm:$0xff]  ;;  %v252_v14 = vld [vmem:[%s406_s1] sm:$0xff]  ;;  %v250_v18 = vld [vmem:[%s405_s0 + $0x10] sm:$0xff] }
   0x5   :  { %v113_v13 = vsel %vm96_vm0, %v253_v12, 0  ;;  %v110_v15 = vsel %vm96_vm0, %v252_v14, 0  ;;  %v248_v16 = vld [vmem:[%s405_s0] sm:$0xff]  ;;  %v249_v17 = vld [vmem:[%s405_s0 + $0x8] sm:$0xff]  ;;  %v251_v19 = vld [vmem:[%s405_s0 + $0x18] sm:$0xff]  ;;  %s182_s0 = sshll.u32 %s336_s4, 4  ;;  %s183_s0 = int_to_ptr.vmem [resolvable:$true] %s182_s0 }
   0x6   :  { %s337_s8 = smov 64   ;;  %s338_s9 = smov 4  }
   0xb   :  { %134 = vmatpush.bf16.xpose.msra.mxu0 %v128_v3  ;;  %286 = vmatpush.bf16.xpose.msra.mxu1 %v128_v3 }
   0xc   :  { %287 = vmatpush.bf16.xpose.msra.mxu2 %v128_v3  ;;  %288 = vmatpush.bf16.xpose.msra.mxu3 %v128_v3 }
  0x13   :  { %135 = vmatpush.bf16.xpose.msra.mxu0 %v125_v5  ;;  %289 = vmatpush.bf16.xpose.msra.mxu1 %v125_v5 }
  0x14   :  { %290 = vmatpush.bf16.xpose.msra.mxu2 %v125_v5  ;;  %291 = vmatpush.bf16.xpose.msra.mxu3 %v125_v5 }
  0x1b   :  { %136 = vmatpush.bf16.xpose.msra.mxu0 %v122_v7  ;;  %292 = vmatpush.bf16.xpose.msra.mxu1 %v122_v7 }
  0x1c   :  { %293 = vmatpush.bf16.xpose.msra.mxu2 %v122_v7  ;;  %294 = vmatpush.bf16.xpose.msra.mxu3 %v122_v7 }
  0x23   :  { %137 = vmatpush.bf16.xpose.msra.mxu0 %v119_v9  ;;  %295 = vmatpush.bf16.xpose.msra.mxu1 %v119_v9 }
  0x24   :  { %296 = vmatpush.bf16.xpose.msra.mxu2 %v119_v9  ;;  %297 = vmatpush.bf16.xpose.msra.mxu3 %v119_v9 }
  0x2b   :  { %138 = vmatpush.bf16.xpose.msra.mxu0 %v116_v11  ;;  %298 = vmatpush.bf16.xpose.msra.mxu1 %v116_v11 }
  0x2c   :  { %299 = vmatpush.bf16.xpose.msra.mxu2 %v116_v11  ;;  %300 = vmatpush.bf16.xpose.msra.mxu3 %v116_v11 }
  0x33   :  { %139 = vmatpush.bf16.xpose.msra.mxu0 %v113_v13  ;;  %301 = vmatpush.bf16.xpose.msra.mxu1 %v113_v13 }
  0x34   :  { %302 = vmatpush.bf16.xpose.msra.mxu2 %v113_v13  ;;  %303 = vmatpush.bf16.xpose.msra.mxu3 %v113_v13 }
  0x3b   :  { %140 = vmatpush.bf16.xpose.msra.mxu0 %v110_v15  ;;  %304 = vmatpush.bf16.xpose.msra.mxu1 %v110_v15 }
  0x3c   :  { %305 = vmatpush.bf16.xpose.msra.mxu2 %v110_v15  ;;  %306 = vmatpush.bf16.xpose.msra.mxu3 %v110_v15 }
  0x42   :  { %244 = vmatmul.msk.bf16.vlgmr.msra.gmra.mxu0 %vm96_vm0, %v248_v16  ;;  %245 = vmatmul.msk.bf16.vlgmr.msra.gmra.mxu1 %vm96_vm0, %v249_v17 }
  0x43   :  { %246 = vmatmul.msk.bf16.vlgmr.msra.gmra.mxu2 %vm96_vm0, %v250_v18  ;;  %247 = vmatmul.msk.bf16.vlgmr.msra.gmra.mxu3 %vm96_vm0, %v251_v19 }
  0xbf   :  { %v142_v20 = vpop.f32.mrf.mxu0  ;;  %v147_v21 = vpop.f32.mrf.mxu1 }
  0xc6   :  { %v152_v22 = vpop.f32.mrf.mxu2  ;;  %v157_v23 = vpop.f32.mrf.mxu3 }
  0xc7   :  { %v144_v24 = vpop.f32.mrf.mxu0  ;;  %v149_v25 = vpop.f32.mrf.mxu1 }
  0xc8   :  { %v263_v26 = vpack.c.bf16 %v144_v24, %v142_v20  ;;  %v268_v27 = vpack.c.bf16 %v149_v25, %v147_v21 }
  0xca   :  { %264 = vst [vmem:[#allocation2] sm:$0xff] %v263_v26  }
  0xcb   :  { %280 = vst [vmem:[#allocation2 + $0x8] sm:$0xff] %v268_v27  }
  0xce   :  { %v154_v28 = vpop.f32.mrf.mxu2  ;;  %v159_v29 = vpop.f32.mrf.mxu3 }
  0xcf   :  { %v273_v30 = vpack.c.bf16 %v154_v28, %v152_v22  ;;  %v278_v31 = vpack.c.bf16 %v159_v29, %v157_v23 }
  0xd1   :  { %281 = vst [vmem:[#allocation2 + $0x10] sm:$0xff] %v273_v30  }
  0xd2   :  { %282 = vst [vmem:[#allocation2 + $0x18] sm:$0xff] %v278_v31  }
  0xd3   :  { %190 = dma.vmem_to_hbm [thread:$0]  %s183_s0, 512, %s185_s7, [#allocation3], %s337_s8, %s337_s8, %s338_s9  }
  0xd4   :  { %334 = dma.done.wait [#allocation3], 512  }
  0xd5   :  { %335 = vsyncadd [#allocation3], 4294966784 }
  0xd6   :  { %195 = vsyncpa [#allocation3], 1 }

</bundles_post_ra>
